<compile_context>
chip_gen: v6e
topology: v6e:2x2x1
jax: 0.10.0
libtpu: 0.0.40
codegen_flags: <defaults>
</compile_context>

<pallas_src>
import functools

import jax
import jax.numpy as jnp
import numpy as np
from jax import lax
from jax.experimental import pallas as pl
from jax.experimental.pallas import tpu as pltpu


def _edge_enhancer_kernel(x_ref, col_ref, w_ref, shift_ref, o_ref,
                          *, height, width):
    HW = height * width
    x = x_ref[0].astype(jnp.float32)                     # (C, H*W)
    col = col_ref[...]                                   # (1, H*W) int32: w index

    # flat spatial index (rows are contiguous ranges -> row masks need no mod)
    flat = lax.broadcasted_iota(jnp.int32, (1, HW), 1)

    # ---- AvgPool2d(3, stride=1, padding=1), count_include_pad=True (/9) ----
    # vertical 3-tap: neighbours are +-W in the flattened index
    up = jnp.where(flat < HW - width,
                   pltpu.roll(x, shift=HW - width, axis=1), 0.0)   # x[f + W]
    down = jnp.where(flat >= width,
                     pltpu.roll(x, shift=width, axis=1), 0.0)      # x[f - W]
    vert = x + up + down
    # horizontal 3-tap: neighbours are +-1, masked at row edges
    left = jnp.where(col != 0,
                     pltpu.roll(vert, shift=1, axis=1), 0.0)       # vert[f - 1]
    right = jnp.where(col != width - 1,
                      pltpu.roll(vert, shift=HW - 1, axis=1), 0.0)  # vert[f + 1]
    pool = (vert + left + right) * (1.0 / 9.0)

    edge = x - pool                                      # (C, H*W)

    # ---- 1x1 conv with BN scale pre-folded into the weight (eval mode) -----
    # single MXU matmul, lanes = H*W (lane dense), f32 accumulation
    y = jnp.dot(w_ref[...], edge, preferred_element_type=jnp.float32)  # (C, H*W)

    # ---- remaining BN shift + Sigmoid ---------------------------------------
    y = jax.nn.sigmoid(y + shift_ref[...])               # (C, 1) broadcast

    o_ref[0] = (x + y).astype(o_ref.dtype)


def edge_enhancer(x_nchw, conv_w, gamma, beta, run_mean, run_var, eps=1e-5):
    """x_nchw: (N, C, H, W); conv_w: (Cout, Cin, 1, 1); BN params: (C,)."""
    N, C, H, W = x_nchw.shape
    HW = H * W

    # Metadata-only reshape (row-major contiguous) -- no HBM transpose.
    x_flat = x_nchw.reshape(N, C, HW)

    # Conv2d weight (Cout, Cin, 1, 1) -> (Cout, Cin); fold BN scale into it:
    #   sigmoid(scale * (W @ e) + shift) == sigmoid((scale*W) @ e + shift)
    w2d = conv_w.reshape(C, C).astype(jnp.float32)
    inv_std = 1.0 / jnp.sqrt(run_var.astype(jnp.float32) + eps)
    g = gamma.astype(jnp.float32)
    scale = g * inv_std                                   # (C,)
    w_folded = scale[:, None] * w2d                       # (C, C)
    shift = (beta.astype(jnp.float32)
             - run_mean.astype(jnp.float32) * scale).reshape(C, 1)

    # Tiny precomputed column index (w coordinate) for the horizontal masks.
    col_idx = (jnp.arange(HW, dtype=jnp.int32) % W).reshape(1, HW)

    kernel = functools.partial(_edge_enhancer_kernel, height=H, width=W)

    out_flat = pl.pallas_call(
        kernel,
        out_shape=jax.ShapeDtypeStruct((N, C, HW), x_nchw.dtype),
        grid=(N,),
        in_specs=[
            pl.BlockSpec((1, C, HW), lambda b: (b, 0, 0)),   # x (one batch elem)
            pl.BlockSpec((1, HW), lambda b: (0, 0)),         # col index (resident)
            pl.BlockSpec((C, C), lambda b: (0, 0)),          # BN-folded conv weight
            pl.BlockSpec((C, 1), lambda b: (0, 0)),          # BN shift
        ],
        out_specs=pl.BlockSpec((1, C, HW), lambda b: (b, 0, 0)),
        compiler_params=pltpu.CompilerParams(dimension_semantics=("parallel",)),
    )(x_flat, col_idx, w_folded, shift)

    return out_flat.reshape(N, C, H, W)


def edge_enhancer_ref(x_nchw, conv_w, gamma, beta, run_mean, run_var, eps=1e-5):
    """Pure-JAX reference (NCHW), matching PyTorch eval-mode semantics."""
    x = x_nchw.astype(jnp.float32)
    N, C, H, W = x.shape
    pooled = lax.reduce_window(
        x, 0.0, lax.add, (1, 1, 3, 3), (1, 1, 1, 1),
        [(0, 0), (0, 0), (1, 1), (1, 1)]) / 9.0
    edge = x - pooled
    y = jnp.einsum('oc,nchw->nohw', conv_w.reshape(C, C), edge)
    inv_std = 1.0 / jnp.sqrt(run_var + eps)
    scale = (gamma * inv_std)[None, :, None, None]
    shift = (beta - run_mean * gamma * inv_std)[None, :, None, None]
    y = jax.nn.sigmoid(y * scale + shift)
    return (x + y).astype(x_nchw.dtype)


if __name__ == "__main__":
    N, C, H, W = 2, 4, 16, 16
    key = jax.random.PRNGKey(0)
    ks = jax.random.split(key, 6)

    x = jax.random.normal(ks[0], (N, C, H, W), jnp.float32)
    conv_w = jax.random.normal(ks[1], (C, C, 1, 1), jnp.float32) * 0.5
    gamma = jax.random.uniform(ks[2], (C,), jnp.float32, 0.5, 1.5)
    beta = jax.random.normal(ks[3], (C,), jnp.float32) * 0.1
    run_mean = jax.random.normal(ks[4], (C,), jnp.float32) * 0.1
    run_var = jax.random.uniform(ks[5], (C,), jnp.float32, 0.5, 1.5)

    out = edge_enhancer(x, conv_w, gamma, beta, run_mean, run_var)
    out = jax.block_until_ready(out)

    ref = edge_enhancer_ref(x, conv_w, gamma, beta, run_mean, run_var)
    np.testing.assert_allclose(np.asarray(out), np.asarray(ref),
                               atol=1e-5, rtol=1e-5)
    print("KERNEL_OK")
</pallas_src>

<mosaic_0001>
module attributes {stable_mosaic.version = 11 : i64} {
  func.func @_edge_enhancer_kernel(%arg0: i32, %arg1: memref<1x4x256xf32, #tpu.memory_space<vmem>>, %arg2: memref<1x256xi32, #tpu.memory_space<vmem>>, %arg3: memref<4x4xf32, #tpu.memory_space<vmem>>, %arg4: memref<4x1xf32, #tpu.memory_space<vmem>>, %arg5: memref<1x4x256xf32, #tpu.memory_space<vmem>>) attributes {dimension_semantics = [#tpu.dimension_semantics<parallel>], iteration_bounds = array<i64: 2>, scalar_prefetch = 0 : i64, scratch_operands = 0 : i64, tpu.core_type = #tpu.core_type<tc>, window_params = [{transform_indices = @transform_0, window_bounds = array<i64: 1, 4, 256>}, {pipeline_mode = #tpu.pipeline_mode<synchronous>, transform_indices = @transform_1, window_bounds = array<i64: 1, 256>}, {pipeline_mode = #tpu.pipeline_mode<synchronous>, transform_indices = @transform_2, window_bounds = array<i64: 4, 4>}, {pipeline_mode = #tpu.pipeline_mode<synchronous>, transform_indices = @transform_3, window_bounds = array<i64: 4, 1>}, {transform_indices = @transform_4, window_bounds = array<i64: 1, 4, 256>}]} {
    %c0 = arith.constant 0 : index
    %c0_0 = arith.constant 0 : index
    %c0_1 = arith.constant 0 : index
    %0 = vector.load %arg1[%c0, %c0_0, %c0_1] : memref<1x4x256xf32, #tpu.memory_space<vmem>>, vector<1x4x256xf32>
    %1 = vector.shape_cast %0 : vector<1x4x256xf32> to vector<4x256xf32>
    %c0_2 = arith.constant 0 : index
    %c0_3 = arith.constant 0 : index
    %2 = vector.load %arg2[%c0_2, %c0_3] : memref<1x256xi32, #tpu.memory_space<vmem>>, vector<1x256xi32>
    %3 = tpu.iota {dimensions = array<i32: 1>} : vector<1x256xi32>
    %c240_i32 = arith.constant 240 : i32
    %4 = vector.broadcast %c240_i32 : i32 to vector<1x256xi32>
    %5 = arith.cmpi slt, %3, %4 : vector<1x256xi32>
    %c240_i32_4 = arith.constant 240 : i32
    %6 = tpu.dynamic_rotate %1 by %c240_i32_4 dim 1 : vector<4x256xf32>, i32 -> vector<4x256xf32>
    %cst = arith.constant 0.000000e+00 : f32
    %7 = vector.shape_cast %5 : vector<1x256xi1> to vector<1x256xi1>
    %8 = vector.broadcast %7 : vector<1x256xi1> to vector<4x256xi1>
    %9 = vector.broadcast %cst : f32 to vector<4x256xf32>
    %10 = arith.select %8, %6, %9 : vector<4x256xi1>, vector<4x256xf32>
    %c16_i32 = arith.constant 16 : i32
    %11 = vector.broadcast %c16_i32 : i32 to vector<1x256xi32>
    %12 = arith.cmpi sge, %3, %11 : vector<1x256xi32>
    %c16_i32_5 = arith.constant 16 : i32
    %13 = tpu.dynamic_rotate %1 by %c16_i32_5 dim 1 : vector<4x256xf32>, i32 -> vector<4x256xf32>
    %cst_6 = arith.constant 0.000000e+00 : f32
    %14 = vector.shape_cast %12 : vector<1x256xi1> to vector<1x256xi1>
    %15 = vector.broadcast %14 : vector<1x256xi1> to vector<4x256xi1>
    %16 = vector.broadcast %cst_6 : f32 to vector<4x256xf32>
    %17 = arith.select %15, %13, %16 : vector<4x256xi1>, vector<4x256xf32>
    %18 = arith.addf %1, %10 : vector<4x256xf32>
    %19 = arith.addf %18, %17 : vector<4x256xf32>
    %c0_i32 = arith.constant 0 : i32
    %20 = vector.broadcast %c0_i32 : i32 to vector<1x256xi32>
    %21 = arith.cmpi ne, %2, %20 : vector<1x256xi32>
    %c1_i32 = arith.constant 1 : i32
    %22 = tpu.dynamic_rotate %19 by %c1_i32 dim 1 : vector<4x256xf32>, i32 -> vector<4x256xf32>
    %cst_7 = arith.constant 0.000000e+00 : f32
    %23 = vector.shape_cast %21 : vector<1x256xi1> to vector<1x256xi1>
    %24 = vector.broadcast %23 : vector<1x256xi1> to vector<4x256xi1>
    %25 = vector.broadcast %cst_7 : f32 to vector<4x256xf32>
    %26 = arith.select %24, %22, %25 : vector<4x256xi1>, vector<4x256xf32>
    %c15_i32 = arith.constant 15 : i32
    %27 = vector.broadcast %c15_i32 : i32 to vector<1x256xi32>
    %28 = arith.cmpi ne, %2, %27 : vector<1x256xi32>
    %c255_i32 = arith.constant 255 : i32
    %29 = tpu.dynamic_rotate %19 by %c255_i32 dim 1 : vector<4x256xf32>, i32 -> vector<4x256xf32>
    %cst_8 = arith.constant 0.000000e+00 : f32
    %30 = vector.shape_cast %28 : vector<1x256xi1> to vector<1x256xi1>
    %31 = vector.broadcast %30 : vector<1x256xi1> to vector<4x256xi1>
    %32 = vector.broadcast %cst_8 : f32 to vector<4x256xf32>
    %33 = arith.select %31, %29, %32 : vector<4x256xi1>, vector<4x256xf32>
    %34 = arith.addf %19, %26 : vector<4x256xf32>
    %35 = arith.addf %34, %33 : vector<4x256xf32>
    %cst_9 = arith.constant 0.111111112 : f32
    %36 = vector.broadcast %cst_9 : f32 to vector<4x256xf32>
    %37 = arith.mulf %35, %36 : vector<4x256xf32>
    %38 = arith.subf %1, %37 : vector<4x256xf32>
    %c0_10 = arith.constant 0 : index
    %c0_11 = arith.constant 0 : index
    %39 = vector.load %arg3[%c0_10, %c0_11] : memref<4x4xf32, #tpu.memory_space<vmem>>, vector<4x4xf32>
    %cst_12 = arith.constant dense<0.000000e+00> : vector<4x256xf32>
    %40 = tpu.matmul %39, %38, %cst_12 {dimension_numbers = #tpu.dot_dimension_numbers<[1], [0], [0], [1], [0, 0, 1, 1], [], []>} : vector<4x4xf32>, vector<4x256xf32>, vector<4x256xf32> -> vector<4x256xf32>
    %c0_13 = arith.constant 0 : index
    %c0_14 = arith.constant 0 : index
    %41 = vector.load %arg4[%c0_13, %c0_14] : memref<4x1xf32, #tpu.memory_space<vmem>>, vector<4x1xf32>
    %42 = vector.broadcast %41 : vector<4x1xf32> to vector<4x256xf32>
    %43 = arith.addf %40, %42 : vector<4x256xf32>
    %44 = arith.negf %43 : vector<4x256xf32>
    %45 = math.exp %44 : vector<4x256xf32>
    %cst_15 = arith.constant 1.000000e+00 : f32
    %46 = vector.broadcast %cst_15 : f32 to vector<4x256xf32>
    %47 = arith.addf %46, %45 : vector<4x256xf32>
    %48 = arith.divf %46, %47 : vector<4x256xf32>
    %49 = arith.addf %1, %48 : vector<4x256xf32>
    %c0_16 = arith.constant 0 : index
    %c0_17 = arith.constant 0 : index
    %c0_18 = arith.constant 0 : index
    %50 = vector.load %arg5[%c0_16, %c0_17, %c0_18] : memref<1x4x256xf32, #tpu.memory_space<vmem>>, vector<1x4x256xf32>
    %51 = vector.shape_cast %50 : vector<1x4x256xf32> to vector<4x256xf32>
    %52 = vector.shape_cast %49 : vector<4x256xf32> to vector<1x4x256xf32>
    tpu.vector_store %arg5[%c0_16, %c0_17, %c0_18], %52 {strides = array<i32>} : memref<1x4x256xf32, #tpu.memory_space<vmem>>, vector<1x4x256xf32>,
    return
  }
  func.func @transform_0(%arg0: i32) -> (i32, i32, i32) {
    %c0_i32 = arith.constant 0 : i32
    %c0_i32_0 = arith.constant 0 : i32
    %c0_i32_1 = arith.constant 0 : i32
    return %arg0, %c0_i32, %c0_i32_0 : i32, i32, i32
  }
  func.func @transform_1(%arg0: i32) -> (i32, i32) {
    %c0_i32 = arith.constant 0 : i32
    %c0_i32_0 = arith.constant 0 : i32
    %c0_i32_1 = arith.constant 0 : i32
    return %c0_i32, %c0_i32_0 : i32, i32
  }
  func.func @transform_2(%arg0: i32) -> (i32, i32) {
    %c0_i32 = arith.constant 0 : i32
    %c0_i32_0 = arith.constant 0 : i32
    %c0_i32_1 = arith.constant 0 : i32
    return %c0_i32, %c0_i32_0 : i32, i32
  }
  func.func @transform_3(%arg0: i32) -> (i32, i32) {
    %c0_i32 = arith.constant 0 : i32
    %c0_i32_0 = arith.constant 0 : i32
    %c0_i32_1 = arith.constant 0 : i32
    return %c0_i32, %c0_i32_0 : i32, i32
  }
  func.func @transform_4(%arg0: i32) -> (i32, i32, i32) {
    %c0_i32 = arith.constant 0 : i32
    %c0_i32_0 = arith.constant 0 : i32
    %c0_i32_1 = arith.constant 0 : i32
    return %arg0, %c0_i32, %c0_i32_0 : i32, i32, i32
  }
}

</mosaic_0001>

<bundles_post_ra>
// kernel: tpu_custom_call.1
= control target key start
LH: loop header
LB: loop body
LE: loop exit
PB: predicated region body
PF: predicated region fallthrough
CT: control target
= control target key end

     0   :  { %9 = vsyncpa [#allocation3], 0  ;;  %s892_s0 = inlined_call_operand.hbm [shape: f32[2,4,256], index: 0, kind: input, shape index: {}]   ;;  %s893_s1 = inlined_call_operand.vmem [shape: s32[1,256], index: 1, kind: input, shape index: {}]   ;;  %s894_s2 = inlined_call_operand.vmem [shape: f32[4,4], index: 2, kind: input, shape index: {}]   ;;  %s895_s3 = inlined_call_operand.vmem [shape: f32[4,1], index: 3, kind: input, shape index: {}]   ;;  %s896_s4 = inlined_call_operand.hbm [shape: f32[2,4,256], index: 4, kind: output, shape index: {}]  }
   0x1   :  { %11 = vsyncpa [#allocation3 + $0x1], 0 }
   0x2   :  { %12 = vsyncpa [#allocation4], 0 }
   0x3   :  { %14 = vsyncpa [#allocation4 + $0x1], 0  ;;  %s721_s15 = smov 0   ;;  %s723_s16 = smov 0  }
   0x4   :  { %s725_s17 = smov 0   ;;  %s727_s18 = smov 0  }
   0x5 LB: > { %s742_s19 = sadd.s32 4294967295, %s686_s18   ;;  %s511_s20 = sadd.s32 4294967294, %s686_s18   ;;  %s686_s18 = sphi %s727_s18, %s913_s18   ;;  %s682_s17 = sphi %s725_s17, %s912_s17   ;;  %s678_s16 = sphi %s723_s16, %s911_s16   ;;  %s674_s15 = sphi %s721_s15, %s910_s15  }
   0x6   : > { %s746_s21 = sadd.s32 1, %s686_s18   ;;  %s27_s22 = sadd.s32 1, %s682_s17 }
   0x7   : > { %s24_s23 = ssub.s32 %s686_s18, %s746_s21  ;;  %p34_p0 = scmp.ne.s32.totalorder %s682_s17, %s678_s16 }
   0x8   : > { %p25_p1 = scmp.eq.s32.totalorder %s24_s23, 0  ;;  %p35_p2 = scmp.eq.s32.totalorder %s686_s18, 0 }
   0x9   : > { %p40_p3 = scmp.ne.s32.totalorder %s678_s16, %s674_s15  ;;  %p41_p4 = scmp.eq.s32.totalorder %s742_s19, 0 }
   0xa   : > { %s758_s24 = scalar_select %p25_p1, %s682_s17, %s27_s22  }
   0xb   : > { %p760_p5 = por %p35_p2, %p34_p0  ;;  %p764_p6 = por %p41_p4, %p40_p3 }
   0xc   : > { %p127_p7 = scmp.eq.s32.totalorder %s742_s19, 1  ;;  %p133_p8 = scmp.eq.s32.totalorder %s511_s20, 1 }
   0xd   : > { %s900_s26 = scalar_select %p764_p6, 1, 0 }
   0xe   : > { %p544_p10 = scmp.lt.s32.totalorder %s686_s18, 2  ;;  %p771_p11 = por %p127_p7, %p34_p0 }
   0xf   : > { %p775_p12 = por %p133_p8, %p40_p3  ;;  %s162_s29 = sand.u32 1, %s682_s17  }
  0x10   : > { %s901_s27 = scalar_select %p771_p11, 1, 0 }
  0x11   : > { %s902_s28 = scalar_select %p775_p12, 1, 0 }
  0x12   : > { %s530_s30 = sshll.u32 %s686_s18, 7  ;;  %s514_s5 = sshll.u32 %s162_s29, 3 }
  0x13   : > { %s784_s8 = scalar_lea.hbm %s892_s0, %s530_s30  ;;  %s166_s9 = scalar_lea.vmem [#allocation2], %s514_s5 }
  0x14   : > { %s174_s10 = sshll.u32 %s166_s9, 4  ;;  %p788_p13 = pnand %p544_p10, %p760_p5  ;;  %s792_s10 = int_to_ptr.vmem [resolvable:$true] %s174_s10 }
  0x15   : > { %s163_s12 = scalar_lea.sflag [#allocation3], %s162_s29  ;;  %s594_s13 = scalar_lea.hbm %s784_s8, 128 }
  0x16   : > { %p595_p2 = scmp.ne.s32.totalorder %s784_s8, %s594_s13  ;;  %p596_p3 = pneg %p788_p13 }
  0x17   : > { %s599_s22 = scalar_lea.hbm %s892_s0, 256  ;;  %p600_p5 = scmp.lt.s32.totalorder %s784_s8, %s892_s0 }
  0x18   : > { %p597_p4 = pnand %p596_p3, %p595_p2  ;;  %p601_p8 = scmp.lt.s32.totalorder %s599_s22, %s594_s13 }
  0x1a   : > { %p598_p7 = pneg %p597_p4  ;;  %p602_p10 = por %p601_p8, %p600_p5 }
  0x1c   : > { %p603_p9 = pnand %p602_p10, %p598_p7 }
  0x1e   : > { %606 = shalt.err (!%p603_p9)
}
  0x1f   : > { %s607_s29 = scalar_lea.vmem %s792_s10, 128  ;;  %s688_s30 = smov [#allocation2]  }
  0x20   : > { %p608_p0 = scmp.ne.s32.totalorder %s792_s10, %s607_s29  ;;  %s612_s5 = sshll.u32 %s688_s30, 4  ;;  %s613_s5 = int_to_ptr.vmem [resolvable:$false] %s612_s5 }
  0x21   : > { %s614_s6 = scalar_lea.vmem %s613_s5, 256  ;;  %p615_p4 = scmp.lt.s32.totalorder %s792_s10, %s613_s5 }
  0x22   : > { %p610_p1 = pnand %p608_p0, %p596_p3  ;;  %p616_p12 = scmp.lt.s32.totalorder %s614_s6, %s607_s29 }
  0x24   : > { %p611_p2 = pneg %p610_p1  ;;  %p617_p11 = por %p616_p12, %p615_p4 }
  0x26   : > { %p618_p6 = pnand %p617_p11, %p611_p2 }
  0x28   : > { %621 = shalt.err (!%p618_p6)
}
  0x29   : > { %539 = dma.hbm_to_vmem [thread:$0]  (!%p788_p13), %s784_s8, 128, %s792_s10, %s163_s12  }
  0x2a   : > { %p904_p9 = scmp.lt.s32.totalorder %s686_s18, 3  ;;  %p905_p7 = scmp.ge.s32.totalorder %s686_s18, 1 }
  0x2c   : > { %p180_p0 = pnand %p905_p7, %p904_p9 }
  0x2d   : > { %s819_s7 = sand.u32 (!%p180_p0), 1, %s678_s16   ;;  %p906_p6 = scmp.ne.s32.totalorder (!%p180_p0), %s900_s26, 0 }
  0x2e   : > { %183 = sbr.rel (%p180_p0) target bundleno = 561 (0x231), region = 36  ;;  %s518_s9 = sshll.u32 (!%p180_p0), %s819_s7, 3 }
  0x2f   : > { %s186_s13 = scalar_lea.sflag (!%p180_p0), [#allocation3], %s819_s7  ;;  %s189_s11 = scalar_lea.vmem (!%p180_p0), [#allocation2], %s518_s9 }
  0x33   : > { %665 = dma.done.wait (%p906_p6), %s186_s13, 128  }
  0x34   : > { %667 = vsyncadd (%p906_p6), %s186_s13, 4294967168  ;;  %v829_v0 = vld [vmem:[%s189_s11] sm:$0xff]  ;;  %s689_s8 = smov 16   ;;  %s690_s10 = smov 112   ;;  %v216_v2 = vlaneseq  ;;  %v691_v5 = vmov 0   ;;  %v694_v21 = vmov 0.0  }
  0x35   : > { %239 = vrot.lane.b32.xlu1 %v829_v0, %s689_s8  ;;  %224 = vrot.lane.b32.xlu0 %v829_v0, %s690_s10  ;;  %v222_v1 = vcombine.high %v829_v0, %v829_v0  ;;  %s692_s26 = smov 1   ;;  %s693_s12 = smov 127   ;;  %v320_v22 = vld [vmem:[%s895_s3] sm:$0xf]  ;;  %vm332_vm12 = vcmask 1043456   ;;  %vm328_vm13 = vcmask 31744  }
  0x36   : > { %v835_v3 = vand.u32 127, %v216_v2  ;;  %584 = vset.pattern.permute.xlu0 %v691_v5  ;;  %401 = vmatprep.mubr.f32.mxu0 %v694_v21  ;;  %v215_v23 = vld [vmem:[%s893_s1] sm:$0x3]  ;;  %v275_v24 = vshrl.u32 %v216_v2, 7  ;;  %s531_s30 = sshll.u32 %s742_s19, 7  ;;  %s213_s5 = scalar_lea.vmem [#allocation5], %s518_s9 }
  0x37   : > { %vm262_vm4 = vcmp.ne.s32.totalorder %v215_v23, 0  ;;  %vm286_vm5 = vcmp.ne.s32.totalorder %v215_v23, 15  ;;  %v319_v52 = vld [vmem:[%s894_s2] sm:$0xf]  ;;  %s441_s6 = sshll.u32 %s213_s5, 4  ;;  %p907_p12 = scmp.ne.s32.totalorder %s901_s27, 0  ;;  %s442_s6 = int_to_ptr.vmem [resolvable:$true] %s441_s6 }
  0x38   : > { %v218_v4 = vadd.s32 128, %v835_v3  ;;  %vm243_vm0 = vcmp.lt.s32.totalorder %v835_v3, 16  ;;  %vm228_vm1 = vcmp.lt.s32.totalorder %v835_v3, 112  ;;  %vm237_vm2 = vcmp.ge.s32.totalorder %v835_v3, 16 }
  0x39   : > { %241 = vrot.lane.b32.xlu1 %v222_v1, %s689_s8  ;;  %226 = vrot.lane.b32.xlu0 %v222_v1, %s690_s10  ;;  %v276_v25 = vsub.s32 0, %v275_v24  ;;  %v280_v26 = vsub.s32 1, %v275_v24  ;;  %v273_v27 = vsel %vm262_vm4, 1, %v691_v5  ;;  %v294_v30 = vsel %vm286_vm5, 1, %v691_v5  ;;  %s439_s8 = scalar_lea.hbm %s896_s4, %s531_s30  ;;  %s427_s10 = scalar_lea.sflag [#allocation4], %s819_s7 }
  0x3a   : > { %vm220_vm3 = vcmp.lt.s32.totalorder %v218_v4, 240  ;;  %vm270_vm6 = vcmp.lt.s32.totalorder %v835_v3, 1  ;;  %vm291_vm9 = vcmp.lt.s32.totalorder %v835_v3, 127 }
  0x3b   : > { %v277_v28 = vrot.slane %v273_v27, %v276_v25  ;;  %v281_v29 = vrot.slane %v273_v27, %v280_v26  ;;  %v298_v32 = vrot.slane %v294_v30, %v276_v25  ;;  %v302_v33 = vrot.slane %v294_v30, %v280_v26 }
  0x3d   : > { %vm282_vm7 = vcmp.eq.s32.totalorder %v277_v28, 1  ;;  %vm283_vm8 = vcmp.eq.s32.totalorder %v281_v29, 1  ;;  %vm303_vm10 = vcmp.eq.s32.totalorder %v298_v32, 1  ;;  %vm304_vm11 = vcmp.eq.s32.totalorder %v302_v33, 1 }
  0xa7   : > { %v240_v6 = vpop.permute.xlu1 %239  ;;  %v225_v7 = vpop.permute.xlu0 %224 }
  0xab   : > { %v242_v8 = vpop.permute.xlu1 %241  ;;  %v227_v9 = vpop.permute.xlu0 %226 }
  0xac   : > { %v245_v10 = vsel %vm243_vm0, %v242_v8, %v240_v6  ;;  %v229_v11 = vsel %vm228_vm1, %v225_v7, %v227_v9  ;;  %v230_v12 = vsel %vm228_vm1, %v227_v9, %v225_v7  ;;  %v244_v13 = vsel %vm243_vm0, %v240_v6, %v242_v8 }
  0xad   : > { %v250_v14 = vsel %vm237_vm2, %v245_v10, 0.0  ;;  %v236_v15 = vsel %vm220_vm3, %v230_v12, 0.0 }
  0xae   : > { %v254_v16 = vcombine.low %v229_v11, %v236_v15  ;;  %v259_v17 = vcombine.low %v250_v14, %v244_v13 }
  0xb0   : > { %v256_v18 = vadd.f32 %v254_v16, %v829_v0 }
  0xb2   : > { %v261_v19 = vadd.f32 %v259_v17, %v256_v18 }
  0xb4   : > { %266 = vrot.lane.b32.xlu0 %v261_v19, %s692_s26  ;;  %v264_v20 = vcombine.high %v261_v19, %v261_v19 }
  0xb6   : > { %268 = vrot.lane.b32.xlu1 %v264_v20, %s692_s26  ;;  %s622_s26 = scalar_lea.vmem %s442_s6, 128 }
  0xb7   : > { %p623_p11 = scmp.ne.s32.totalorder %s442_s6, %s622_s26 }
  0xb8   : > { %287 = vrot.lane.b32.xlu0 %v261_v19, %s693_s12 }
  0xb9   : > { %p624_p13 = pnand %p623_p11, %p907_p12 }
  0xba   : > { %289 = vrot.lane.b32.xlu1 %v264_v20, %s693_s12  ;;  %s695_s12 = smov [#allocation5]  }
  0xbb   : > { %p625_p1 = pneg %p624_p13  ;;  %s626_s19 = sshll.u32 %s695_s12, 4  ;;  %s627_s19 = int_to_ptr.vmem [resolvable:$false] %s626_s19 }
  0xbc   : > { %323 = vperm.xlu0 %584, %v320_v22   ;;  %s628_s9 = scalar_lea.vmem %s627_s19, 256  ;;  %p629_p3 = scmp.lt.s32.totalorder %s442_s6, %s627_s19 }
  0xbd   : > { %p630_p5 = scmp.lt.s32.totalorder %s628_s9, %s622_s26 }
  0xbf   : > { %p631_p8 = por %p630_p5, %p629_p3 }
  0xc1   : > { %p632_p10 = pnand %p631_p8, %p625_p1 }
 0x126   : > { %v267_v31 = vpop.permute.xlu0 %266 }
 0x128   : > { %v269_v34 = vpop.permute.xlu1 %268 }
 0x129   : > { %v271_v35 = vsel %vm270_vm6, %v267_v31, %v269_v34  ;;  %v272_v36 = vsel %vm270_vm6, %v269_v34, %v267_v31 }
 0x12a   : > { %v284_v37 = vsel %vm282_vm7, %v272_v36, 0.0  ;;  %v285_v38 = vsel %vm283_vm8, %v271_v35, 0.0  ;;  %v288_v40 = vpop.permute.xlu0 %287 }
 0x12b   : > { %v309_v39 = vcombine.low %v284_v37, %v285_v38 }
 0x12c   : > { %v290_v41 = vpop.permute.xlu1 %289 }
 0x12d   : > { %v292_v42 = vsel %vm291_vm9, %v288_v40, %v290_v41  ;;  %v293_v43 = vsel %vm291_vm9, %v290_v41, %v288_v40  ;;  %v311_v46 = vadd.f32 %v309_v39, %v261_v19 }
 0x12e   : > { %v305_v44 = vsel %vm303_vm10, %v292_v42, 0.0  ;;  %v306_v45 = vsel %vm304_vm11, %v293_v43, 0.0 }
 0x12f   : > { %v314_v47 = vcombine.low %v305_v44, %v306_v45 }
 0x131   : > { %v316_v48 = vadd.f32 %v314_v47, %v311_v46 }
 0x133   : > { %v317_v49 = vmul.f32 0.11111111, %v316_v48 }
 0x135   : > { %v318_v50 = vsub.f32 %v829_v0, %v317_v49 }
 0x137   : > { %v327_v51 = vcombine.high %v318_v50, %v318_v50  ;;  %v324_v53 = vpop.permute.xlu0 %323 }
 0x139   : > { %520 = vmatprep.subr.msk.mxu0 %vm332_vm12, %v327_v51 }
 0x13a   : > { %521 = vmatpush1.msk.msra.mxu0 %vm332_vm12, %v318_v50 }
 0x13b   : > { %522 = vmatmul.mubr.msk.f32.vlgmr.msra.gmra.mxu0 %vm328_vm13, %v319_v52 }
 0x1fb   : > { %v403_v54 = vpop.f32.mrf.mxu0 }
 0x1fc   : > { %v404_v55 = vadd.f32 %v403_v54, %v324_v53 }
 0x1fd   : > { %v405_v56 = vpop.f32.mrf.mxu0 }
 0x1fe   : > { %v523_v57 = vmul.f32 -1.442695, %v404_v55  ;;  %v406_v58 = vadd.f32 %v405_v56, %v324_v53 }
 0x200   : > { %586 = vpow2.f32 %v523_v57  ;;  %v524_v59 = vmul.f32 -1.442695, %v406_v58 }
 0x202   : > { %588 = vpow2.f32 %v524_v59 }
 0x20d   : > { %v587_v60 = vpop.eup %586 }
 0x20e   : > { %v414_v61 = vadd.f32 1.0, %v587_v60 }
 0x20f   : > { %v589_v62 = vpop.eup %588 }
 0x210   : > { %v415_v63 = vadd.f32 1.0, %v589_v62  ;;  %590 = vrcp.f32 %v414_v61 }
 0x212   : > { %592 = vrcp.f32 %v415_v63 }
 0x21d   : > { %v591_v1 = vpop.eup %590 }
 0x21f   : > { %v593_v2 = vpop.eup %592 }
 0x220   : > { %v422_v3 = vcombine.low %v591_v1, %v593_v2 }
 0x222   : > { %v424_v4 = vadd.f32 %v422_v3, %v829_v0 }
 0x224   : > { %425 = vst [vmem:[%s213_s5] sm:$0xff] %v424_v4 }
 0x225   : > { %635 = shalt.err (!%p632_p10)
}
 0x226   : > { %s636_s14 = scalar_lea.hbm %s439_s8, 128  ;;  %s640_s22 = scalar_lea.hbm %s896_s4, 256 }
 0x227   : > { %p637_p2 = scmp.ne.s32.totalorder %s439_s8, %s636_s14  ;;  %p641_p7 = scmp.lt.s32.totalorder %s439_s8, %s896_s4 }
 0x228   : > { %p642_p0 = scmp.lt.s32.totalorder %s640_s22, %s636_s14 }
 0x229   : > { %p638_p4 = pnand %p637_p2, %p907_p12 }
 0x22a   : > { %p643_p6 = por %p642_p0, %p641_p7 }
 0x22b   : > { %p639_p9 = pneg %p638_p4 }
 0x22d   : > { %p644_p11 = pnand %p643_p6, %p639_p9 }
 0x22f   : > { %647 = shalt.err (!%p644_p11)
}
 0x230   : > { %534 = dma.vmem_to_hbm [thread:$0]  (%p907_p12), %s442_s6, 128, %s439_s8, %s427_s10  }
 0x231 PF: > { %s453_s29 = sand.u32 1, %s674_s15   ;;  %p908_p13 = scmp.ne.s32.totalorder %s902_s28, 0 }
 0x232   : > { %p909_p1 = scmp.ge.s32.totalorder %s686_s18, 2  ;;  %s454_s30 = scalar_lea.sflag [#allocation4], %s453_s29 }
 0x234   : > { %p541_p3 = pnand %p909_p1, %p908_p13 }
 0x236   : > { %p542_p5 = pneg %p541_p3 }
 0x238   : > { %669 = dma.done.wait (%p542_p5), %s454_s30, 128  }
 0x239   : > { %671 = vsyncadd (%p542_p5), %s454_s30, 4294967168  ;;  %p17_p8 = scmp.ge.s32.totalorder %s746_s21, 4   ;;  %s910_s15 = smov %s678_s16 }
 0x23a   : > { %s911_s16 = smov %s682_s17  ;;  %s912_s17 = smov %s758_s24 }
 0x23b   : > { %s913_s18 = smov %s746_s21  ;;  %19 = sbr.rel (!%p17_p8) target bundleno = 5 (0x5), region = 81 }
 0x240   :  { %459 = vsyncpa [#allocation3], 1 }
 0x241   :  { %461 = vsyncpa [#allocation3 + $0x1], 1 }
 0x242   :  { %462 = vsyncpa [#allocation4], 1 }
 0x243   :  { %464 = vsyncpa [#allocation4 + $0x1], 1 }

</bundles_post_ra>
